<compile_context>
chip_gen: v5e
topology: v5e:2x2
jax: 0.10.0
libtpu: 0.0.40
codegen_flags: <defaults>
</compile_context>

<pallas_src>
import functools

import jax
import jax.numpy as jnp
from jax.experimental import pallas as pl
from jax.experimental.pallas import tpu as pltpu

hwgq_steps = {
    1: 1.0576462792297525,
    2: 0.6356366866203315,
    3: 0.3720645813370479,
    4: 0.21305606790772952,
    8: 0.020300567823662602,
    16: 9.714825915156693e-05,
}

_LANE = 128
_SUBLANE = 8
# ~2 MiB of f32 per block (1 MiB for bf16).
_TARGET_BLOCK_ELEMS = 512 * 1024
# Lane-dense widths to try (all multiples of 128), widest first.
_WIDTH_CANDIDATES = (2048, 1024, 512, 256, 128)


def _thresholds(bit, symmetric):
    step = hwgq_steps[bit]
    if symmetric:
        lvls = 2.0 ** bit / 2.0
        max_thr = (lvls - 0.5) * step
        min_thr = -max_thr
    else:
        lvls = float(2 ** bit - 1)
        max_thr = step * lvls
        min_thr = 0.0
    return step, min_thr, max_thr


def _hwgq_quantize_jnp(x, step, min_thr, max_thr):
    y = jnp.round(x / step) * step
    return jnp.clip(y, min_thr, max_thr)


def _hwgq_kernel(x_ref, o_ref, *, step, min_thr, max_thr):
    # Compute in f32 regardless of storage dtype (mem-bound op; VPU has slack).
    x = x_ref[...].astype(jnp.float32)
    y = jnp.round(x / step) * step
    o_ref[...] = jnp.clip(y, min_thr, max_thr).astype(o_ref.dtype)


def _choose_width(n):
    """Pick a wide lane-dense last dim; pad only if nothing divides n."""
    for c in _WIDTH_CANDIDATES:
        if n % c == 0:
            return c, 0
    c = _SUBLANE * _LANE  # 1024; fallback pays one pad + one slice copy
    return c, (-n) % c


def _choose_tile_rows(rows, width):
    """Rows per block: ~2 MiB f32, multiple of 8, >= ~8 grid steps when possible."""
    tr_cap = max(_SUBLANE, (_TARGET_BLOCK_ELEMS // width) // _SUBLANE * _SUBLANE)
    if rows <= tr_cap:
        return rows  # single block covering the full (possibly non-multiple-of-8) extent
    # Aim for >= ~8 grid steps so megacore (v7x) can shard the grid across both TCs.
    tr_for_8 = ((rows + 7) // 8 + _SUBLANE - 1) // _SUBLANE * _SUBLANE
    return max(_SUBLANE, min(tr_cap, tr_for_8))


def hwgq_forward(x, bit=2, symmetric=False, act=None, *, min_pallas_elems=1 << 16):
    """HWGQ quantizer forward. x: any shape (NCHW expected), float dtype."""
    if bit > 32:
        raise NotImplementedError(f"bit={bit} not supported")
    if bit == 32:
        # Identity path (optionally apply an activation) — no quantization.
        return act(x) if act is not None else x
    if bit not in hwgq_steps:
        raise ValueError(f"no HWGQ step defined for bit={bit}")

    step, min_thr, max_thr = _thresholds(bit, symmetric)

    orig_shape = x.shape
    n = x.size
    if n == 0:
        return x
    if n < min_pallas_elems:
        # Tiny activations: XLA fused elementwise beats pallas_call launch overhead.
        return _hwgq_quantize_jnp(x.astype(jnp.float32), step, min_thr, max_thr).astype(x.dtype)

    flat = x.reshape(-1)
    width, pad = _choose_width(n)
    if pad:
        flat = jnp.pad(flat, (0, pad))
    rows = (n + pad) // width
    x2d = flat.reshape(rows, width)

    tr = _choose_tile_rows(rows, width)
    grid = (pl.cdiv(rows, tr),)

    kernel = functools.partial(
        _hwgq_kernel, step=step, min_thr=min_thr, max_thr=max_thr
    )

    y2d = pl.pallas_call(
        kernel,
        out_shape=jax.ShapeDtypeStruct((rows, width), x.dtype),
        grid_spec=pltpu.PrefetchScalarGridSpec(
            num_scalar_prefetch=0,
            grid=grid,
            in_specs=[pl.BlockSpec((tr, width), lambda i: (i, 0))],
            out_specs=pl.BlockSpec((tr, width), lambda i: (i, 0)),
        ),
        compiler_params=pltpu.CompilerParams(
            dimension_semantics=("parallel",)
        ),
    )(x2d)

    if pad:
        return y2d.reshape(-1)[:n].reshape(orig_shape)
    return y2d.reshape(orig_shape)


def _hwgq_ref(x, bit=2, symmetric=False):
    """Pure-JAX reference mirroring the PyTorch module."""
    step, min_thr, max_thr = _thresholds(bit, symmetric)
    return _hwgq_quantize_jnp(x, step, min_thr, max_thr)


if __name__ == "__main__":
    key = jax.random.PRNGKey(0)

    # NCHW input matching the module usage: batch=2, channels=4, spatial=16x16.
    x = jax.random.normal(key, (2, 4, 16, 16), dtype=jnp.float32)

    # Default HWGQ(bit=2, symmetric=False); force the Pallas path at this small size.
    y = jax.block_until_ready(hwgq_forward(x, bit=2, symmetric=False, min_pallas_elems=0))
    y_ref = _hwgq_ref(x, bit=2, symmetric=False)
    assert y.shape == x.shape and y.dtype == x.dtype
    assert jnp.allclose(y, y_ref, atol=1e-6, rtol=1e-6)

    # Symmetric path.
    y_sym = jax.block_until_ready(hwgq_forward(x, bit=2, symmetric=True, min_pallas_elems=0))
    assert jnp.allclose(y_sym, _hwgq_ref(x, bit=2, symmetric=True), atol=1e-6, rtol=1e-6)

    # Unaligned element count -> exercises the pad + slice fallback.
    x_odd = jax.random.normal(jax.random.PRNGKey(1), (3, 5, 7, 11), dtype=jnp.float32)
    y_odd = jax.block_until_ready(hwgq_forward(x_odd, bit=3, symmetric=False, min_pallas_elems=0))
    assert jnp.allclose(y_odd, _hwgq_ref(x_odd, bit=3, symmetric=False), atol=1e-6, rtol=1e-6)

    # Moderate size taking the default (non-forced) Pallas path.
    x_big = jax.random.normal(jax.random.PRNGKey(2), (8, 16, 32, 32), dtype=jnp.float32)
    y_big = jax.block_until_ready(hwgq_forward(x_big, bit=2, symmetric=False))
    assert jnp.allclose(y_big, _hwgq_ref(x_big, bit=2, symmetric=False), atol=1e-6, rtol=1e-6)

    print("KERNEL_OK")
</pallas_src>

<mosaic_0001>
module attributes {stable_mosaic.version = 11 : i64} {
  func.func @_hwgq_kernel(%arg0: i32, %arg1: memref<1x2048xf32, #tpu.memory_space<vmem>>, %arg2: memref<1x2048xf32, #tpu.memory_space<vmem>>) attributes {dimension_semantics = [#tpu.dimension_semantics<parallel>], iteration_bounds = array<i64: 1>, scalar_prefetch = 0 : i64, scratch_operands = 0 : i64, tpu.core_type = #tpu.core_type<tc>, window_params = [{transform_indices = @transform_0, window_bounds = array<i64: 1, 2048>}, {transform_indices = @transform_1, window_bounds = array<i64: 1, 2048>}]} {
    %c0 = arith.constant 0 : index
    %c0_0 = arith.constant 0 : index
    %0 = vector.load %arg1[%c0, %c0_0] : memref<1x2048xf32, #tpu.memory_space<vmem>>, vector<1x2048xf32>
    %cst = arith.constant 0.635636687 : f32
    %1 = vector.broadcast %cst : f32 to vector<1x2048xf32>
    %2 = arith.divf %0, %1 : vector<1x2048xf32>
    %3 = math.roundeven %2 : vector<1x2048xf32>
    %cst_1 = arith.constant 0.635636687 : f32
    %4 = vector.broadcast %cst_1 : f32 to vector<1x2048xf32>
    %5 = arith.mulf %3, %4 : vector<1x2048xf32>
    %cst_2 = arith.constant 0.000000e+00 : f32
    %cst_3 = arith.constant 1.90691006 : f32
    %6 = vector.broadcast %cst_2 : f32 to vector<1x2048xf32>
    %7 = arith.maximumf %6, %5 : vector<1x2048xf32>
    %8 = vector.broadcast %cst_3 : f32 to vector<1x2048xf32>
    %9 = arith.minimumf %8, %7 : vector<1x2048xf32>
    %c0_4 = arith.constant 0 : index
    %c0_5 = arith.constant 0 : index
    %10 = vector.load %arg2[%c0_4, %c0_5] : memref<1x2048xf32, #tpu.memory_space<vmem>>, vector<1x2048xf32>
    tpu.vector_store %arg2[%c0_4, %c0_5], %9 {strides = array<i32>} : memref<1x2048xf32, #tpu.memory_space<vmem>>, vector<1x2048xf32>,
    return
  }
  func.func @transform_0(%arg0: i32) -> (i32, i32) {
    %c0_i32 = arith.constant 0 : i32
    %c0_i32_0 = arith.constant 0 : i32
    return %arg0, %c0_i32 : i32, i32
  }
  func.func @transform_1(%arg0: i32) -> (i32, i32) {
    %c0_i32 = arith.constant 0 : i32
    %c0_i32_0 = arith.constant 0 : i32
    return %arg0, %c0_i32 : i32, i32
  }
}

</mosaic_0001>

<bundles_post_ra>
// kernel: tpu_custom_call.1
= control target key start
LH: loop header
LB: loop body
LE: loop exit
PB: predicated region body
PF: predicated region fallthrough
CT: control target
= control target key end

     0   :  { %6 = vsyncpa [#allocation3], 0  ;;  %s153_s0 = inlined_call_operand.hbm [shape: f32[1,2048], index: 0, kind: input, shape index: {}]   ;;  %s154_s1 = inlined_call_operand.hbm [shape: f32[1,2048], index: 1, kind: output, shape index: {}]  }
   0x1   :  { %7 = vsyncpa [#allocation4], 0  ;;  %s13_s8 = sshll.u32 %s153_s0, 4  ;;  %s134_s9 = smov [#allocation2]   ;;  %s14_s8 = int_to_ptr.hbm [resolvable:$true] %s13_s8 }
   0x2   :  { %s15_s10 = sshll.u32 %s134_s9, 4  ;;  %s16_s10 = int_to_ptr.vmem [resolvable:$true] %s15_s10 }
   0x3   :  { %18 = dma.hbm_to_vmem [thread:$0]  %s14_s8, 256, %s16_s10, [#allocation3]  }
   0x4   :  { %130 = dma.done.wait [#allocation3], 256  }
   0x5   :  { %131 = vsyncadd [#allocation3], 4294967040  ;;  %v135_v0 = vmov 0.6356367   ;;  %v23_v5 = vld [vmem:[#allocation2] sm:$0xff]  ;;  %v24_v7 = vld [vmem:[#allocation2 + $0x8] sm:$0xff] }
   0x6   :  { %80 = vrcp.f32 %v135_v0  ;;  %s136_s0 = smov [#allocation5]   ;;  %s51_s14 = sshll.u32 %s154_s1, 4  ;;  %s52_s14 = int_to_ptr.hbm [resolvable:$true] %s51_s14 }
   0x7   :  { %s49_s11 = sshll.u32 %s136_s0, 4  ;;  %s50_s11 = int_to_ptr.vmem [resolvable:$true] %s49_s11 }
   0xc   :  { %v81_v1 = vpop.eup %80 }
   0xd   :  { %v26_v2 = vmul.f32 0.6356367, %v81_v1  ;;  %vm30_vm0 = vweird.f32 %v81_v1 }
   0xf   :  { %v27_v3 = vsub.f32 1.0, %v26_v2 }
  0x11   :  { %v28_v4 = vmul.f32 %v81_v1, %v27_v3 }
  0x13   :  { %v29_v6 = vadd.f32 %v81_v1, %v28_v4 }
  0x15   :  { %v31_v8 = vsel %vm30_vm0, %v81_v1, %v29_v6 }
  0x16   :  { %v32_v9 = vmul.f32 %v31_v8, %v23_v5  ;;  %v33_v10 = vmul.f32 %v31_v8, %v24_v7 }
  0x18   :  { %v63_v11 = vcvt.f32.s32 %v32_v9  ;;  %v61_v12 = vand.u32 2147483647, %v32_v9  ;;  %v71_v13 = vcvt.f32.s32 %v33_v10  ;;  %v66_v15 = vand.u32 2147483648, %v32_v9 }
  0x19   :  { %v69_v16 = vand.u32 2147483647, %v33_v10  ;;  %v74_v18 = vand.u32 2147483648, %v33_v10 }
  0x1a   :  { %v64_v14 = vcvt.s32.f32 %v63_v11  ;;  %v72_v17 = vcvt.s32.f32 %v71_v13  ;;  %vm62_vm1 = vcmp.lt.f32.partialorder %v61_v12, 8388608.0 }
  0x1b   :  { %vm70_vm2 = vcmp.lt.f32.partialorder %v69_v16, 8388608.0 }
  0x1c   :  { %v65_v19 = vand.u32 2147483647, %v64_v14  ;;  %v73_v20 = vand.u32 2147483647, %v72_v17 }
  0x1e   :  { %v67_v21 = vor.u32 %v66_v15, %v65_v19  ;;  %v75_v22 = vor.u32 %v74_v18, %v73_v20 }
  0x20   :  { %v68_v23 = vsel %vm62_vm1, %v67_v21, %v32_v9  ;;  %v76_v25 = vsel %vm70_vm2, %v75_v22, %v33_v10 }
  0x21   :  { %v36_v24 = vmul.f32 0.6356367, %v68_v23  ;;  %v37_v26 = vmul.f32 0.6356367, %v76_v25 }
  0x23   :  { %v38_v27 = vmax.f32 %v36_v24, 0.0  ;;  %v39_v28 = vmax.f32 %v37_v26, 0.0 }
  0x25   :  { %v40_v29 = vmin.f32 %v38_v27, 1.9069101  ;;  %v41_v30 = vmin.f32 %v39_v28, 1.9069101 }
  0x27   :  { %42 = vst [vmem:[#allocation5] sm:$0xff] %v40_v29 }
  0x28   :  { %43 = vst [vmem:[#allocation5 + $0x8] sm:$0xff] %v41_v30 }
  0x29   :  { %54 = dma.vmem_to_hbm [thread:$0]  %s50_s11, 256, %s52_s14, [#allocation4]  }
  0x2a   :  { %132 = dma.done.wait [#allocation4], 256  }
  0x2b   :  { %133 = vsyncadd [#allocation4], 4294967040 }
  0x2c   :  { %59 = vsyncpa [#allocation3], 1 }
  0x2d   :  { %60 = vsyncpa [#allocation4], 1 }

</bundles_post_ra>
